<compile_context>
chip_gen: v7x
topology: tpu7x:2x2x1
jax: 0.10.0
libtpu: 0.0.40
codegen_flags: <defaults>
</compile_context>

<pallas_src>
import math

import jax
import jax.numpy as jnp
import numpy as np
from jax.experimental import pallas as pl
from jax.experimental.pallas import tpu as pltpu


def _round_up(v, m):
    return (v + m - 1) // m * m


# --------------------------- parameter packing ------------------------------


def _pack_params(params, mxu_dtype):
    """Pack every conv/downsample weight into one (R, WC) matrix and every bias
    into one (R, NB) matrix.

    Each layer's weight block starts at a 128-aligned column. Within a conv
    block, tap j occupies columns [j*cin_pad, j*cin_pad+cin) with cin_pad
    rounded to the sublane tile (8 rows for f32, 16 for bf16) so every im2col
    tap store is tile-aligned. Pad columns are zero, so whatever sits in the
    pad rows of the patch scratch never contributes to the matmul.
    """
    sub_align = 16 if np.dtype(mxu_dtype).itemsize == 2 else 8

    r_max = 0
    for block in params:
        for sub in block["subs"]:
            r_max = max(r_max, sub["cout"])
        if block["downsample"] is not None:
            r_max = max(r_max, int(block["downsample"]["w_pt"].shape[0]))
    R = _round_up(r_max, 8)

    entries = []      # (column offset, np weight block)
    biases = []       # 1-D np bias vectors (column index == boff)
    blocks_meta = []
    col = 0
    for block in params:
        layers_meta = []
        for sub in block["subs"]:
            cin, cout = sub["cin"], sub["cout"]
            k, d = sub["k"], sub["dilation"]
            cin_pad = _round_up(cin, sub_align)
            width = k * cin_pad
            woff = _round_up(col, 128)
            w_pt = np.asarray(sub["w_pt"], np.float32)          # (cout, cin, k)
            wblk = np.zeros((cout, width), np.float32)
            for j in range(k):
                wblk[:, j * cin_pad:j * cin_pad + cin] = w_pt[:, :, j]
            entries.append((woff, wblk))
            boff = len(biases)
            biases.append(np.asarray(sub["b"], np.float32))
            layers_meta.append(dict(cin=cin, cout=cout, k=k, d=d,
                                    cin_pad=cin_pad, woff=woff, boff=boff))
            col = woff + width
        ds_meta = None
        ds = block["downsample"]
        if ds is not None:
            wd = np.asarray(ds["w_pt"], np.float32)[:, :, 0]     # (cout_b, cin_b)
            cout_b, cin_b = wd.shape
            woff = _round_up(col, 128)
            entries.append((woff, wd))
            boff = len(biases)
            biases.append(np.asarray(ds["b"], np.float32))
            ds_meta = dict(cin=int(cin_b), cout=int(cout_b), woff=woff,
                           boff=boff)
            col = woff + cin_b
        blocks_meta.append(dict(layers=layers_meta, ds=ds_meta))

    WC = _round_up(max(col, 128), 128)
    w_all = np.zeros((R, WC), np.float32)
    for woff, wblk in entries:
        w_all[:wblk.shape[0], woff:woff + wblk.shape[1]] = wblk
    NB = len(biases)
    b_all = np.zeros((R, NB), np.float32)
    for i, b in enumerate(biases):
        b_all[:b.shape[0], i] = b

    kc_pad_max = max(m["k"] * m["cin_pad"]
                     for bm in blocks_meta for m in bm["layers"])
    c_final = blocks_meta[-1]["layers"][-1]["cout"]
    return (jnp.asarray(w_all).astype(mxu_dtype), jnp.asarray(b_all),
            blocks_meta, kc_pad_max, c_final)


def _pick_batch_tile(B, L):
    """Smallest batch tile Bt dividing B with Bt*L a multiple of 128 (lane
    dense); falls back to Bt=B (full-array block, always legal)."""
    if L % 128 == 0:
        return 1
    bt = 128 // math.gcd(L, 128)          # minimal bt with bt*L % 128 == 0
    for t in range(bt, B + 1, bt):
        if B % t == 0:
            return t
    return B


# ------------------------- fused network kernel -----------------------------


def _make_fused_tcn_kernel(blocks_meta, L, LB, mxu_dtype):
    """Whole-network kernel for one (C, LB) batch-tile slab (LB = Bt*L lanes).

    Ref layout: (x_ref, w_all_ref, b_all_ref, out_ref, patch_scratch).
    """
    shifts = sorted({(m["k"] - 1 - j) * m["d"]
                     for bm in blocks_meta for m in bm["layers"]
                     for j in range(m["k"])})

    def kernel(x_ref, w_ref, b_ref, out_ref, patch):
        # Zero the im2col scratch once per step: pad rows stay finite and their
        # (zero) weight columns null them out in every matmul.
        patch[...] = jnp.zeros_like(patch)

        # Per-shift causal masks over the folded (batch-segment, L) lane axis,
        # hoisted out of the layer loops (broadcasts are not CSE'd by JAX).
        pos = jax.lax.broadcasted_iota(jnp.int32, (1, LB), 1) % L
        masks = {s: pos >= s for s in shifts if 0 < s < L}

        cur = x_ref[...].astype(jnp.float32)              # (C0, LB), f32 VPU

        for bm in blocks_meta:
            # Residual branch at block entry: keep only `res` live through the
            # conv chain; the 1x1 downsample matmul rides in MXU slack.
            ds = bm["ds"]
            if ds is not None:
                wd = w_ref[0:ds["cout"], ds["woff"]:ds["woff"] + ds["cin"]]
                bd = b_ref[0:ds["cout"], ds["boff"]:ds["boff"] + 1]
                res = jnp.dot(wd, cur.astype(mxu_dtype),
                              preferred_element_type=jnp.float32) + bd
            else:
                res = cur

            # Stacked ConvTemporalSubBlocks: causal dilated conv -> ReLU.
            for m in bm["layers"]:
                cin, cout, k, d = m["cin"], m["cout"], m["k"], m["d"]
                cin_pad, woff, boff = m["cin_pad"], m["woff"], m["boff"]
                # im2col: ONE full-width store per tap (roll->XLU, select->VPU).
                for j in range(k):
                    s = (k - 1 - j) * d
                    r0 = j * cin_pad
                    if s == 0:
                        tap = cur
                    elif s >= L:
                        # Receptive field exceeds the sequence: all-zero tap.
                        tap = jnp.zeros_like(cur)
                    else:
                        tap = jnp.where(masks[s],
                                        pltpu.roll(cur, s, axis=1), 0.0)
                    patch[r0:r0 + cin, :] = tap.astype(mxu_dtype)
                w = w_ref[0:cout, woff:woff + k * cin_pad]
                b = b_ref[0:cout, boff:boff + 1]
                y = jnp.dot(w, patch[0:k * cin_pad, :],
                            preferred_element_type=jnp.float32) + b
                cur = jnp.maximum(y, 0.0)
                # TODO(synk): train-mode dropout not implemented (eval = id).

            # Residual add + output ReLU (fused epilogue).
            cur = jnp.maximum(cur + res, 0.0)

        out_ref[...] = cur.astype(out_ref.dtype)

    return kernel


# ------------------------------ forward pass --------------------------------


def temporal_conv_net_forward(x_ncl, params, mxu_dtype=jnp.bfloat16):
    """x_ncl: (B, C0, L), NCL like PyTorch. Returns (B, C_final, L)."""
    B, C0, L = (int(s) for s in x_ncl.shape)
    w_all, b_all, blocks_meta, kc_pad_max, c_final = _pack_params(params,
                                                                  mxu_dtype)

    bt = _pick_batch_tile(B, L)
    LB = bt * L
    steps = B // bt

    # NCL -> channels-major with batch folded into the lane axis: (C0, B*L).
    x_cl = jnp.transpose(x_ncl, (1, 0, 2)).reshape(C0, B * L)

    kernel = _make_fused_tcn_kernel(blocks_meta, L, LB, mxu_dtype)

    in_specs = [
        pl.BlockSpec((C0, LB), lambda i: (0, i)),
        pl.BlockSpec(w_all.shape, lambda i: (0, 0)),   # packed weights (bf16)
        pl.BlockSpec(b_all.shape, lambda i: (0, 0)),   # packed biases (f32)
    ]
    out_spec = pl.BlockSpec((c_final, LB), lambda i: (0, i))

    # Advisory cost estimate for XLA scheduling.
    flops = 0
    for bm in blocks_meta:
        for m in bm["layers"]:
            flops += 2 * B * L * (m["k"] * m["cin"]) * m["cout"]
        if bm["ds"] is not None:
            flops += 2 * B * L * bm["ds"]["cin"] * bm["ds"]["cout"]
    itm = np.dtype(mxu_dtype).itemsize
    bytes_accessed = (4 * (int(x_cl.size) + c_final * B * L)
                      + itm * int(w_all.size) + 4 * int(b_all.size))

    # VMEM budget: double-buffered x/out blocks + weight buffers + patch +
    # headroom for activations; clamp for v7x's 64 MiB physical VMEM.
    max_c = max([C0] + [m["cout"] for bm in blocks_meta for m in bm["layers"]])
    est = (2 * (C0 + c_final) * LB * 4
           + 2 * (int(w_all.size) * itm + int(b_all.size) * 4)
           + kc_pad_max * LB * itm
           + 8 * max_c * LB * 4)
    vmem_limit = int(min(max(4 * est, 8 * 2**20), 48 * 2**20))

    out_cl = pl.pallas_call(
        kernel,
        out_shape=jax.ShapeDtypeStruct((c_final, B * L), x_ncl.dtype),
        grid_spec=pltpu.PrefetchScalarGridSpec(
            num_scalar_prefetch=0,
            grid=(steps,),
            in_specs=in_specs,
            out_specs=out_spec,
            scratch_shapes=[pltpu.VMEM((kc_pad_max, LB), mxu_dtype)],
        ),
        compiler_params=pltpu.CompilerParams(
            dimension_semantics=("parallel",),
            vmem_limit_bytes=vmem_limit),
        cost_estimate=pl.CostEstimate(flops=int(flops), transcendentals=0,
                                      bytes_accessed=int(bytes_accessed)),
    )(x_cl, w_all, b_all)

    return jnp.transpose(out_cl.reshape(c_final, B, L), (1, 0, 2))


# ------------------------- parameter initialization -------------------------


def init_temporal_conv_net(key, conv_channel_sizes_, kernel_sizes_, dilations_):
    """Deterministic init mirroring the PyTorch module.

    Conv weights: xavier_uniform_ on (Cout, Cin, k); bias: PyTorch Conv1d
    default uniform(-1/sqrt(Cin*k), 1/sqrt(Cin*k)). weight_norm is an identity
    reparameterization at init (g = ||v||), so it is folded into the weights.
    DCAN uses stride=1, padding=(k-1)*dilation, which this kernel implements.
    """
    params = []
    for channels, ksizes, dils in zip(conv_channel_sizes_, kernel_sizes_,
                                      dilations_):
        block = {"subs": [], "downsample": None}
        pairs = list(zip(channels[:-1], channels[1:]))
        for (cin, cout), k, d in zip(pairs, ksizes, dils):
            key, kw, kb = jax.random.split(key, 3)
            bound = float(np.sqrt(6.0 / (cin * k + cout * k)))
            w_pt = jax.random.uniform(kw, (cout, cin, k), jnp.float32, -bound,
                                      bound)
            bb = float(1.0 / np.sqrt(cin * k))
            b = jax.random.uniform(kb, (cout,), jnp.float32, -bb, bb)
            block["subs"].append({"w_pt": w_pt, "b": b, "cin": int(cin),
                                  "cout": int(cout), "k": int(k),
                                  "dilation": int(d)})
        if channels[0] != channels[-1]:
            cin, cout = channels[0], channels[-1]
            key, kw, kb = jax.random.split(key, 3)
            bound = float(np.sqrt(6.0 / (cin + cout)))
            wd = jax.random.uniform(kw, (cout, cin, 1), jnp.float32, -bound,
                                    bound)
            bb = float(1.0 / np.sqrt(cin))
            bd = jax.random.uniform(kb, (cout,), jnp.float32, -bb, bb)
            block["downsample"] = {"w_pt": wd, "b": bd}
        params.append(block)
    return params


# -------------------------- pure-JAX reference ------------------------------


def _ref_forward(x_ncl, params):
    x = x_ncl                                             # (B, C, L)
    L = x.shape[-1]
    for block in params:
        y = x
        for sub in block["subs"]:
            w = sub["w_pt"]                               # (cout, cin, k)
            k = w.shape[-1]
            d = sub["dilation"]
            pad = (k - 1) * d
            xp = jnp.pad(y, ((0, 0), (0, 0), (pad, 0)))
            out = sub["b"][None, :, None]
            for j in range(k):
                out = out + jnp.einsum("oc,bct->bot", w[:, :, j],
                                       xp[:, :, j * d:j * d + L])
            y = jnp.maximum(out, 0.0)
        ds = block["downsample"]
        if ds is None:
            res = x
        else:
            res = (jnp.einsum("oc,bct->bot", ds["w_pt"][:, :, 0], x) +
                   ds["b"][None, :, None])
        x = jnp.maximum(y + res, 0.0)
    return x


# ----------------------------------- main ------------------------------------

if __name__ == "__main__":
    # DCAN-style config (stride=1, padding=(k-1)*dilation, dropout eval=identity)
    conv_channel_sizes_ = [[8, 16, 16], [16, 16, 16]]
    kernel_sizes_ = [[3, 3], [3, 3]]
    dilations_ = [[1, 1], [2, 2]]

    key = jax.random.PRNGKey(0)
    key, pkey, xkey = jax.random.split(key, 3)
    params = init_temporal_conv_net(pkey, conv_channel_sizes_, kernel_sizes_,
                                    dilations_)

    # B*L = 256 -> two lane-dense (128-wide) grid steps (keeps both v7x TCs busy).
    B, C0, L = 8, conv_channel_sizes_[0][0], 32
    x = jax.random.normal(xkey, (B, C0, L), jnp.float32)   # NCL like PyTorch

    out = jax.block_until_ready(temporal_conv_net_forward(x, params))
    ref = jax.block_until_ready(_ref_forward(x, params))

    assert out.shape == (B, conv_channel_sizes_[-1][-1], L), out.shape
    # bf16 MXU operands (f32 accumulation) vs. f32 reference -> loosened tol.
    np.testing.assert_allclose(np.asarray(out), np.asarray(ref), atol=6e-2,
                               rtol=6e-2)
    print("KERNEL_OK")
</pallas_src>

<mosaic_0001>
module attributes {stable_mosaic.version = 11 : i64} {
  func.func @kernel(%arg0: i32, %arg1: memref<8x128xf32, #tpu.memory_space<vmem>>, %arg2: memref<16x640xbf16, #tpu.memory_space<vmem>>, %arg3: memref<16x5xf32, #tpu.memory_space<vmem>>, %arg4: memref<16x128xf32, #tpu.memory_space<vmem>>, %arg5: memref<48x128xbf16, #tpu.memory_space<vmem>>) attributes {dimension_semantics = [#tpu.dimension_semantics<parallel>], iteration_bounds = array<i64: 2>, scalar_prefetch = 0 : i64, scratch_operands = 1 : i64, tpu.core_type = #tpu.core_type<tc>, window_params = [{transform_indices = @transform_0, window_bounds = array<i64: 8, 128>}, {pipeline_mode = #tpu.pipeline_mode<synchronous>, transform_indices = @transform_1, window_bounds = array<i64: 16, 640>}, {pipeline_mode = #tpu.pipeline_mode<synchronous>, transform_indices = @transform_2, window_bounds = array<i64: 16, 5>}, {transform_indices = @transform_3, window_bounds = array<i64: 16, 128>}]} {
    %cst = arith.constant 0.000000e+00 : bf16
    %0 = vector.broadcast %cst : bf16 to vector<48x128xbf16>
    %c0 = arith.constant 0 : index
    %c0_0 = arith.constant 0 : index
    %1 = vector.load %arg5[%c0, %c0_0] : memref<48x128xbf16, #tpu.memory_space<vmem>>, vector<48x128xbf16>
    tpu.vector_store %arg5[%c0, %c0_0], %0 {strides = array<i32>} : memref<48x128xbf16, #tpu.memory_space<vmem>>, vector<48x128xbf16>,
    %2 = tpu.iota {dimensions = array<i32: 1>} : vector<1x128xi32>
    %c32_i32 = arith.constant 32 : i32
    %c0_i32 = arith.constant 0 : i32
    %3 = arith.cmpi eq, %c32_i32, %c0_i32 : i32
    %c1_i32 = arith.constant 1 : i32
    %4 = arith.select %3, %c1_i32, %c32_i32 : i32
    %5 = vector.broadcast %4 : i32 to vector<1x128xi32>
    %6 = arith.remsi %2, %5 : vector<1x128xi32>
    %c0_i32_1 = arith.constant 0 : i32
    %7 = vector.broadcast %c0_i32_1 : i32 to vector<1x128xi32>
    %8 = arith.cmpi ne, %6, %7 : vector<1x128xi32>
    %c0_i32_2 = arith.constant 0 : i32
    %9 = vector.broadcast %c0_i32_2 : i32 to vector<1x128xi32>
    %10 = arith.cmpi slt, %6, %9 : vector<1x128xi32>
    %c0_i32_3 = arith.constant 0 : i32
    %11 = arith.cmpi slt, %4, %c0_i32_3 : i32
    %12 = vector.broadcast %11 : i1 to vector<1x128xi1>
    %13 = vector.broadcast %12 : vector<1x128xi1> to vector<1x128xi1>
    %14 = arith.xori %10, %13 : vector<1x128xi1>
    %15 = arith.andi %14, %8 : vector<1x128xi1>
    %16 = vector.broadcast %4 : i32 to vector<1x128xi32>
    %17 = arith.addi %6, %16 : vector<1x128xi32>
    %18 = arith.select %15, %17, %6 : vector<1x128xi1>, vector<1x128xi32>
    %c1_i32_4 = arith.constant 1 : i32
    %19 = vector.broadcast %c1_i32_4 : i32 to vector<1x128xi32>
    %20 = arith.cmpi sge, %18, %19 : vector<1x128xi32>
    %c2_i32 = arith.constant 2 : i32
    %21 = vector.broadcast %c2_i32 : i32 to vector<1x128xi32>
    %22 = arith.cmpi sge, %18, %21 : vector<1x128xi32>
    %c4_i32 = arith.constant 4 : i32
    %23 = vector.broadcast %c4_i32 : i32 to vector<1x128xi32>
    %24 = arith.cmpi sge, %18, %23 : vector<1x128xi32>
    %c0_5 = arith.constant 0 : index
    %c0_6 = arith.constant 0 : index
    %25 = vector.load %arg1[%c0_5, %c0_6] : memref<8x128xf32, #tpu.memory_space<vmem>>, vector<8x128xf32>
    %c0_7 = arith.constant 0 : index
    %c256 = arith.constant 256 : index
    %26 = vector.load %arg2[%c0_7, %c256] : memref<16x640xbf16, #tpu.memory_space<vmem>>, vector<16x8xbf16>
    %c0_8 = arith.constant 0 : index
    %c2 = arith.constant 2 : index
    %27 = vector.load %arg3[%c0_8, %c2] : memref<16x5xf32, #tpu.memory_space<vmem>>, vector<16x1xf32>
    %28 = arith.truncf %25 : vector<8x128xf32> to vector<8x128xbf16>
    %cst_9 = arith.constant dense<0.000000e+00> : vector<16x128xf32>
    %29 = tpu.matmul %26, %28, %cst_9 {dimension_numbers = #tpu.dot_dimension_numbers<[1], [0], [0], [1], [0, 0, 1, 1], [], []>} : vector<16x8xbf16>, vector<8x128xbf16>, vector<16x128xf32> -> vector<16x128xf32>
    %30 = vector.broadcast %27 : vector<16x1xf32> to vector<16x128xf32>
    %31 = arith.addf %29, %30 : vector<16x128xf32>
    %c2_i32_10 = arith.constant 2 : i32
    %32 = tpu.dynamic_rotate %25 by %c2_i32_10 dim 1 : vector<8x128xf32>, i32 -> vector<8x128xf32>
    %cst_11 = arith.constant 0.000000e+00 : f32
    %33 = vector.shape_cast %22 : vector<1x128xi1> to vector<1x128xi1>
    %34 = vector.broadcast %33 : vector<1x128xi1> to vector<8x128xi1>
    %35 = vector.broadcast %cst_11 : f32 to vector<8x128xf32>
    %36 = arith.select %34, %32, %35 : vector<8x128xi1>, vector<8x128xf32>
    %37 = arith.truncf %36 : vector<8x128xf32> to vector<8x128xbf16>
    %c0_12 = arith.constant 0 : index
    %c0_13 = arith.constant 0 : index
    %38 = vector.load %arg5[%c0_12, %c0_13] : memref<48x128xbf16, #tpu.memory_space<vmem>>, vector<8x128xbf16>
    tpu.vector_store %arg5[%c0_12, %c0_13], %37 {strides = array<i32>} : memref<48x128xbf16, #tpu.memory_space<vmem>>, vector<8x128xbf16>,
    %c1_i32_14 = arith.constant 1 : i32
    %39 = tpu.dynamic_rotate %25 by %c1_i32_14 dim 1 : vector<8x128xf32>, i32 -> vector<8x128xf32>
    %cst_15 = arith.constant 0.000000e+00 : f32
    %40 = vector.shape_cast %20 : vector<1x128xi1> to vector<1x128xi1>
    %41 = vector.broadcast %40 : vector<1x128xi1> to vector<8x128xi1>
    %42 = vector.broadcast %cst_15 : f32 to vector<8x128xf32>
    %43 = arith.select %41, %39, %42 : vector<8x128xi1>, vector<8x128xf32>
    %44 = arith.truncf %43 : vector<8x128xf32> to vector<8x128xbf16>
    %c16 = arith.constant 16 : index
    %c0_16 = arith.constant 0 : index
    %45 = vector.load %arg5[%c16, %c0_16] : memref<48x128xbf16, #tpu.memory_space<vmem>>, vector<8x128xbf16>
    tpu.vector_store %arg5[%c16, %c0_16], %44 {strides = array<i32>} : memref<48x128xbf16, #tpu.memory_space<vmem>>, vector<8x128xbf16>,
    %46 = arith.truncf %25 : vector<8x128xf32> to vector<8x128xbf16>
    %c32 = arith.constant 32 : index
    %c0_17 = arith.constant 0 : index
    %47 = vector.load %arg5[%c32, %c0_17] : memref<48x128xbf16, #tpu.memory_space<vmem>>, vector<8x128xbf16>
    tpu.vector_store %arg5[%c32, %c0_17], %46 {strides = array<i32>} : memref<48x128xbf16, #tpu.memory_space<vmem>>, vector<8x128xbf16>,
    %c0_18 = arith.constant 0 : index
    %c0_19 = arith.constant 0 : index
    %48 = vector.load %arg2[%c0_18, %c0_19] : memref<16x640xbf16, #tpu.memory_space<vmem>>, vector<16x48xbf16>
    %c0_20 = arith.constant 0 : index
    %c0_21 = arith.constant 0 : index
    %49 = vector.load %arg3[%c0_20, %c0_21] : memref<16x5xf32, #tpu.memory_space<vmem>>, vector<16x1xf32>
    %c0_22 = arith.constant 0 : index
    %c0_23 = arith.constant 0 : index
    %50 = vector.load %arg5[%c0_22, %c0_23] : memref<48x128xbf16, #tpu.memory_space<vmem>>, vector<48x128xbf16>
    %cst_24 = arith.constant dense<0.000000e+00> : vector<16x128xf32>
    %51 = tpu.matmul %48, %50, %cst_24 {dimension_numbers = #tpu.dot_dimension_numbers<[1], [0], [0], [1], [0, 0, 1, 1], [], []>} : vector<16x48xbf16>, vector<48x128xbf16>, vector<16x128xf32> -> vector<16x128xf32>
    %52 = vector.broadcast %49 : vector<16x1xf32> to vector<16x128xf32>
    %53 = arith.addf %51, %52 : vector<16x128xf32>
    %cst_25 = arith.constant 0.000000e+00 : f32
    %54 = vector.broadcast %cst_25 : f32 to vector<16x128xf32>
    %55 = arith.maximumf %53, %54 : vector<16x128xf32>
    %c2_i32_26 = arith.constant 2 : i32
    %56 = tpu.dynamic_rotate %55 by %c2_i32_26 dim 1 : vector<16x128xf32>, i32 -> vector<16x128xf32>
    %cst_27 = arith.constant 0.000000e+00 : f32
    %57 = vector.shape_cast %22 : vector<1x128xi1> to vector<1x128xi1>
    %58 = vector.broadcast %57 : vector<1x128xi1> to vector<16x128xi1>
    %59 = vector.broadcast %cst_27 : f32 to vector<16x128xf32>
    %60 = arith.select %58, %56, %59 : vector<16x128xi1>, vector<16x128xf32>
    %61 = arith.truncf %60 : vector<16x128xf32> to vector<16x128xbf16>
    %c0_28 = arith.constant 0 : index
    %c0_29 = arith.constant 0 : index
    %62 = vector.load %arg5[%c0_28, %c0_29] : memref<48x128xbf16, #tpu.memory_space<vmem>>, vector<16x128xbf16>
    tpu.vector_store %arg5[%c0_28, %c0_29], %61 {strides = array<i32>} : memref<48x128xbf16, #tpu.memory_space<vmem>>, vector<16x128xbf16>,
    %c1_i32_30 = arith.constant 1 : i32
    %63 = tpu.dynamic_rotate %55 by %c1_i32_30 dim 1 : vector<16x128xf32>, i32 -> vector<16x128xf32>
    %cst_31 = arith.constant 0.000000e+00 : f32
    %64 = vector.shape_cast %20 : vector<1x128xi1> to vector<1x128xi1>
    %65 = vector.broadcast %64 : vector<1x128xi1> to vector<16x128xi1>
    %66 = vector.broadcast %cst_31 : f32 to vector<16x128xf32>
    %67 = arith.select %65, %63, %66 : vector<16x128xi1>, vector<16x128xf32>
    %68 = arith.truncf %67 : vector<16x128xf32> to vector<16x128xbf16>
    %c16_32 = arith.constant 16 : index
    %c0_33 = arith.constant 0 : index
    %69 = vector.load %arg5[%c16_32, %c0_33] : memref<48x128xbf16, #tpu.memory_space<vmem>>, vector<16x128xbf16>
    tpu.vector_store %arg5[%c16_32, %c0_33], %68 {strides = array<i32>} : memref<48x128xbf16, #tpu.memory_space<vmem>>, vector<16x128xbf16>,
    %70 = arith.truncf %55 : vector<16x128xf32> to vector<16x128xbf16>
    %c32_34 = arith.constant 32 : index
    %c0_35 = arith.constant 0 : index
    %71 = vector.load %arg5[%c32_34, %c0_35] : memref<48x128xbf16, #tpu.memory_space<vmem>>, vector<16x128xbf16>
    tpu.vector_store %arg5[%c32_34, %c0_35], %70 {strides = array<i32>} : memref<48x128xbf16, #tpu.memory_space<vmem>>, vector<16x128xbf16>,
    %c0_36 = arith.constant 0 : index
    %c128 = arith.constant 128 : index
    %72 = vector.load %arg2[%c0_36, %c128] : memref<16x640xbf16, #tpu.memory_space<vmem>>, vector<16x48xbf16>
    %c0_37 = arith.constant 0 : index
    %c1 = arith.constant 1 : index
    %73 = vector.load %arg3[%c0_37, %c1] : memref<16x5xf32, #tpu.memory_space<vmem>>, vector<16x1xf32>
    %c0_38 = arith.constant 0 : index
    %c0_39 = arith.constant 0 : index
    %74 = vector.load %arg5[%c0_38, %c0_39] : memref<48x128xbf16, #tpu.memory_space<vmem>>, vector<48x128xbf16>
    %cst_40 = arith.constant dense<0.000000e+00> : vector<16x128xf32>
    %75 = tpu.matmul %72, %74, %cst_40 {dimension_numbers = #tpu.dot_dimension_numbers<[1], [0], [0], [1], [0, 0, 1, 1], [], []>} : vector<16x48xbf16>, vector<48x128xbf16>, vector<16x128xf32> -> vector<16x128xf32>
    %76 = vector.broadcast %73 : vector<16x1xf32> to vector<16x128xf32>
    %77 = arith.addf %75, %76 : vector<16x128xf32>
    %cst_41 = arith.constant 0.000000e+00 : f32
    %78 = vector.broadcast %cst_41 : f32 to vector<16x128xf32>
    %79 = arith.maximumf %77, %78 : vector<16x128xf32>
    %80 = arith.addf %79, %31 : vector<16x128xf32>
    %cst_42 = arith.constant 0.000000e+00 : f32
    %81 = vector.broadcast %cst_42 : f32 to vector<16x128xf32>
    %82 = arith.maximumf %80, %81 : vector<16x128xf32>
    %c4_i32_43 = arith.constant 4 : i32
    %83 = tpu.dynamic_rotate %82 by %c4_i32_43 dim 1 : vector<16x128xf32>, i32 -> vector<16x128xf32>
    %cst_44 = arith.constant 0.000000e+00 : f32
    %84 = vector.shape_cast %24 : vector<1x128xi1> to vector<1x128xi1>
    %85 = vector.broadcast %84 : vector<1x128xi1> to vector<16x128xi1>
    %86 = vector.broadcast %cst_44 : f32 to vector<16x128xf32>
    %87 = arith.select %85, %83, %86 : vector<16x128xi1>, vector<16x128xf32>
    %88 = arith.truncf %87 : vector<16x128xf32> to vector<16x128xbf16>
    %c0_45 = arith.constant 0 : index
    %c0_46 = arith.constant 0 : index
    %89 = vector.load %arg5[%c0_45, %c0_46] : memref<48x128xbf16, #tpu.memory_space<vmem>>, vector<16x128xbf16>
    tpu.vector_store %arg5[%c0_45, %c0_46], %88 {strides = array<i32>} : memref<48x128xbf16, #tpu.memory_space<vmem>>, vector<16x128xbf16>,
    %c2_i32_47 = arith.constant 2 : i32
    %90 = tpu.dynamic_rotate %82 by %c2_i32_47 dim 1 : vector<16x128xf32>, i32 -> vector<16x128xf32>
    %cst_48 = arith.constant 0.000000e+00 : f32
    %91 = vector.shape_cast %22 : vector<1x128xi1> to vector<1x128xi1>
    %92 = vector.broadcast %91 : vector<1x128xi1> to vector<16x128xi1>
    %93 = vector.broadcast %cst_48 : f32 to vector<16x128xf32>
    %94 = arith.select %92, %90, %93 : vector<16x128xi1>, vector<16x128xf32>
    %95 = arith.truncf %94 : vector<16x128xf32> to vector<16x128xbf16>
    %c16_49 = arith.constant 16 : index
    %c0_50 = arith.constant 0 : index
    %96 = vector.load %arg5[%c16_49, %c0_50] : memref<48x128xbf16, #tpu.memory_space<vmem>>, vector<16x128xbf16>
    tpu.vector_store %arg5[%c16_49, %c0_50], %95 {strides = array<i32>} : memref<48x128xbf16, #tpu.memory_space<vmem>>, vector<16x128xbf16>,
    %97 = arith.truncf %82 : vector<16x128xf32> to vector<16x128xbf16>
    %c32_51 = arith.constant 32 : index
    %c0_52 = arith.constant 0 : index
    %98 = vector.load %arg5[%c32_51, %c0_52] : memref<48x128xbf16, #tpu.memory_space<vmem>>, vector<16x128xbf16>
    tpu.vector_store %arg5[%c32_51, %c0_52], %97 {strides = array<i32>} : memref<48x128xbf16, #tpu.memory_space<vmem>>, vector<16x128xbf16>,
    %c0_53 = arith.constant 0 : index
    %c384 = arith.constant 384 : index
    %99 = vector.load %arg2[%c0_53, %c384] : memref<16x640xbf16, #tpu.memory_space<vmem>>, vector<16x48xbf16>
    %c0_54 = arith.constant 0 : index
    %c3 = arith.constant 3 : index
    %100 = vector.load %arg3[%c0_54, %c3] : memref<16x5xf32, #tpu.memory_space<vmem>>, vector<16x1xf32>
    %c0_55 = arith.constant 0 : index
    %c0_56 = arith.constant 0 : index
    %101 = vector.load %arg5[%c0_55, %c0_56] : memref<48x128xbf16, #tpu.memory_space<vmem>>, vector<48x128xbf16>
    %cst_57 = arith.constant dense<0.000000e+00> : vector<16x128xf32>
    %102 = tpu.matmul %99, %101, %cst_57 {dimension_numbers = #tpu.dot_dimension_numbers<[1], [0], [0], [1], [0, 0, 1, 1], [], []>} : vector<16x48xbf16>, vector<48x128xbf16>, vector<16x128xf32> -> vector<16x128xf32>
    %103 = vector.broadcast %100 : vector<16x1xf32> to vector<16x128xf32>
    %104 = arith.addf %102, %103 : vector<16x128xf32>
    %cst_58 = arith.constant 0.000000e+00 : f32
    %105 = vector.broadcast %cst_58 : f32 to vector<16x128xf32>
    %106 = arith.maximumf %104, %105 : vector<16x128xf32>
    %c4_i32_59 = arith.constant 4 : i32
    %107 = tpu.dynamic_rotate %106 by %c4_i32_59 dim 1 : vector<16x128xf32>, i32 -> vector<16x128xf32>
    %cst_60 = arith.constant 0.000000e+00 : f32
    %108 = vector.shape_cast %24 : vector<1x128xi1> to vector<1x128xi1>
    %109 = vector.broadcast %108 : vector<1x128xi1> to vector<16x128xi1>
    %110 = vector.broadcast %cst_60 : f32 to vector<16x128xf32>
    %111 = arith.select %109, %107, %110 : vector<16x128xi1>, vector<16x128xf32>
    %112 = arith.truncf %111 : vector<16x128xf32> to vector<16x128xbf16>
    %c0_61 = arith.constant 0 : index
    %c0_62 = arith.constant 0 : index
    %113 = vector.load %arg5[%c0_61, %c0_62] : memref<48x128xbf16, #tpu.memory_space<vmem>>, vector<16x128xbf16>
    tpu.vector_store %arg5[%c0_61, %c0_62], %112 {strides = array<i32>} : memref<48x128xbf16, #tpu.memory_space<vmem>>, vector<16x128xbf16>,
    %c2_i32_63 = arith.constant 2 : i32
    %114 = tpu.dynamic_rotate %106 by %c2_i32_63 dim 1 : vector<16x128xf32>, i32 -> vector<16x128xf32>
    %cst_64 = arith.constant 0.000000e+00 : f32
    %115 = vector.shape_cast %22 : vector<1x128xi1> to vector<1x128xi1>
    %116 = vector.broadcast %115 : vector<1x128xi1> to vector<16x128xi1>
    %117 = vector.broadcast %cst_64 : f32 to vector<16x128xf32>
    %118 = arith.select %116, %114, %117 : vector<16x128xi1>, vector<16x128xf32>
    %119 = arith.truncf %118 : vector<16x128xf32> to vector<16x128xbf16>
    %c16_65 = arith.constant 16 : index
    %c0_66 = arith.constant 0 : index
    %120 = vector.load %arg5[%c16_65, %c0_66] : memref<48x128xbf16, #tpu.memory_space<vmem>>, vector<16x128xbf16>
    tpu.vector_store %arg5[%c16_65, %c0_66], %119 {strides = array<i32>} : memref<48x128xbf16, #tpu.memory_space<vmem>>, vector<16x128xbf16>,
    %121 = arith.truncf %106 : vector<16x128xf32> to vector<16x128xbf16>
    %c32_67 = arith.constant 32 : index
    %c0_68 = arith.constant 0 : index
    %122 = vector.load %arg5[%c32_67, %c0_68] : memref<48x128xbf16, #tpu.memory_space<vmem>>, vector<16x128xbf16>
    tpu.vector_store %arg5[%c32_67, %c0_68], %121 {strides = array<i32>} : memref<48x128xbf16, #tpu.memory_space<vmem>>, vector<16x128xbf16>,
    %c0_69 = arith.constant 0 : index
    %c512 = arith.constant 512 : index
    %123 = vector.load %arg2[%c0_69, %c512] : memref<16x640xbf16, #tpu.memory_space<vmem>>, vector<16x48xbf16>
    %c0_70 = arith.constant 0 : index
    %c4 = arith.constant 4 : index
    %124 = vector.load %arg3[%c0_70, %c4] : memref<16x5xf32, #tpu.memory_space<vmem>>, vector<16x1xf32>
    %c0_71 = arith.constant 0 : index
    %c0_72 = arith.constant 0 : index
    %125 = vector.load %arg5[%c0_71, %c0_72] : memref<48x128xbf16, #tpu.memory_space<vmem>>, vector<48x128xbf16>
    %cst_73 = arith.constant dense<0.000000e+00> : vector<16x128xf32>
    %126 = tpu.matmul %123, %125, %cst_73 {dimension_numbers = #tpu.dot_dimension_numbers<[1], [0], [0], [1], [0, 0, 1, 1], [], []>} : vector<16x48xbf16>, vector<48x128xbf16>, vector<16x128xf32> -> vector<16x128xf32>
    %127 = vector.broadcast %124 : vector<16x1xf32> to vector<16x128xf32>
    %128 = arith.addf %126, %127 : vector<16x128xf32>
    %cst_74 = arith.constant 0.000000e+00 : f32
    %129 = vector.broadcast %cst_74 : f32 to vector<16x128xf32>
    %130 = arith.maximumf %128, %129 : vector<16x128xf32>
    %131 = arith.addf %130, %82 : vector<16x128xf32>
    %cst_75 = arith.constant 0.000000e+00 : f32
    %132 = vector.broadcast %cst_75 : f32 to vector<16x128xf32>
    %133 = arith.maximumf %131, %132 : vector<16x128xf32>
    %c0_76 = arith.constant 0 : index
    %c0_77 = arith.constant 0 : index
    %134 = vector.load %arg4[%c0_76, %c0_77] : memref<16x128xf32, #tpu.memory_space<vmem>>, vector<16x128xf32>
    tpu.vector_store %arg4[%c0_76, %c0_77], %133 {strides = array<i32>} : memref<16x128xf32, #tpu.memory_space<vmem>>, vector<16x128xf32>,
    return
  }
  func.func @transform_0(%arg0: i32) -> (i32, i32) {
    %c0_i32 = arith.constant 0 : i32
    %c0_i32_0 = arith.constant 0 : i32
    return %c0_i32, %arg0 : i32, i32
  }
  func.func @transform_1(%arg0: i32) -> (i32, i32) {
    %c0_i32 = arith.constant 0 : i32
    %c0_i32_0 = arith.constant 0 : i32
    %c0_i32_1 = arith.constant 0 : i32
    return %c0_i32, %c0_i32_0 : i32, i32
  }
  func.func @transform_2(%arg0: i32) -> (i32, i32) {
    %c0_i32 = arith.constant 0 : i32
    %c0_i32_0 = arith.constant 0 : i32
    %c0_i32_1 = arith.constant 0 : i32
    return %c0_i32, %c0_i32_0 : i32, i32
  }
  func.func @transform_3(%arg0: i32) -> (i32, i32) {
    %c0_i32 = arith.constant 0 : i32
    %c0_i32_0 = arith.constant 0 : i32
    return %c0_i32, %arg0 : i32, i32
  }
}

</mosaic_0001>

<bundles_post_ra>
// kernel: tpu_custom_call.1
= control target key start
LH: loop header
LB: loop body
LE: loop exit
PB: predicated region body
PF: predicated region fallthrough
CT: control target
= control target key end

     0   :  { %8 = vsyncpa [#allocation4], 0  ;;  %s1306_s0 = inlined_call_operand.vmem [shape: f32[8,256], index: 0, kind: input, shape index: {}]   ;;  %s1307_s1 = inlined_call_operand.hbm [shape: bf16[16,640], index: 1, kind: input, shape index: {}]   ;;  %s1308_s2 = inlined_call_operand.vmem [shape: f32[16,5], index: 2, kind: input, shape index: {}]   ;;  %s1309_s3 = inlined_call_operand.hbm [shape: f32[16,256], index: 3, kind: output, shape index: {}]  }
   0x1   :  { %9 = vsyncpa [#allocation5], 0 }
   0x2   :  { %11 = vsyncpa [#allocation5 + $0x1], 0  ;;  %s1059_s12 = smov 0   ;;  %s1061_s13 = smov 0  }
   0x3   :  { %s1063_s14 = smov 0   ;;  %s1065_s15 = smov 0  }
   0x4 LB: > { %s1080_s16 = sadd.s32 4294967295, %s1020_s15   ;;  %s713_s17 = sadd.s32 4294967294, %s1020_s15   ;;  %s1020_s15 = sphi %s1065_s15, %s1329_s15   ;;  %s1016_s14 = sphi %s1063_s14, %s1328_s14   ;;  %s1012_s13 = sphi %s1061_s13, %s1327_s13   ;;  %s1008_s12 = sphi %s1059_s12, %s1326_s12  }
   0x5   : > { %s1084_s18 = sadd.s32 1, %s1020_s15   ;;  %s92_s19 = sadd.s32 1, %s1016_s14 }
   0x6   : > { %s89_s20 = ssub.s32 %s1020_s15, %s1084_s18  ;;  %p102_p0 = scmp.ne.s32.totalorder %s1016_s14, %s1012_s13 }
   0x7   : > { %p90_p1 = scmp.eq.s32.totalorder %s89_s20, 0  ;;  %p103_p2 = scmp.eq.s32.totalorder %s1080_s16, 1 }
   0x8   : > { %p108_p3 = scmp.ne.s32.totalorder %s1012_s13, %s1008_s12  ;;  %p109_p4 = scmp.eq.s32.totalorder %s713_s17, 1 }
   0x9   : > { %s1095_s21 = scalar_select %p90_p1, %s1016_s14, %s92_s19  }
   0xa   : > { %p1097_p5 = por %p103_p2, %p102_p0  ;;  %p1101_p6 = por %p109_p4, %p108_p3 }
   0xb   : > { %p714_p7 = scmp.ge.s32.totalorder %s1020_s15, 1  ;;  %p116_p8 = scmp.lt.s32.totalorder %s1020_s15, 3 }
   0xc   : > { %s1313_s22 = scalar_select %p1097_p5, 1, 0 }
   0xd   : > { %s1314_s23 = scalar_select %p1101_p6, 1, 0 }
   0xe   : > { %p1310_p9 = scmp.eq.s32.totalorder %s1080_s16, 0  ;;  %p1108_p10 = pnand %p714_p7, %p116_p8 }
   0xf   : > { %s1022_s25 = smov [#allocation3]   ;;  %s926_s30 = scalar_lea.hbm %s1307_s1, 640 }
  0x10   : > { %s1315_s24 = scalar_select %p1108_p10, 1, 0 }
  0x11   : > { %s128_s26 = sshll.u32 %s1022_s25, 4  ;;  %p805_p11 = pneg %p1108_p10  ;;  %s129_s26 = int_to_ptr.vmem [resolvable:$true] %s128_s26 }
  0x12   : > { %p927_p13 = scmp.ne.s32.totalorder %s1307_s1, %s926_s30  ;;  %p933_p3 = scmp.lt.u32.totalorder %s926_s30, %s1307_s1 }
  0x13   : > { %p1116_p12 = pnand %p1310_p9, %p805_p11 }
  0x15   : > { %p928_p0 = pneg %p1116_p12 }
  0x17   : > { %p929_p1 = pnand %p928_p0, %p927_p13 }
  0x19   : > { %p930_p2 = pneg %p929_p1 }
  0x1b   : > { %p935_p4 = pnand %p933_p3, %p930_p2 }
  0x1d   : > { %938 = shalt.err (!%p935_p4)
}
  0x1e   : > { %s939_s8 = scalar_lea.vmem %s129_s26, 640  ;;  %p947_p9 = scmp.lt.s32.totalorder %s129_s26, %s129_s26 }
  0x1f   : > { %p940_p7 = scmp.ne.s32.totalorder %s129_s26, %s939_s8  ;;  %p948_p6 = scmp.lt.s32.totalorder %s939_s8, %s939_s8 }
  0x21   : > { %p942_p8 = pnand %p940_p7, %p928_p0  ;;  %p949_p5 = por %p948_p6, %p947_p9 }
  0x23   : > { %p943_p11 = pneg %p942_p8 }
  0x25   : > { %p950_p10 = pnand %p949_p5, %p943_p11 }
  0x27   : > { %953 = shalt.err (!%p950_p10)
}
  0x28   : > { %s1023_s9 = smov 320   ;;  %s1024_s10 = smov 20  }
  0x29   : > { %808 = dma.hbm_to_vmem [thread:$0]  (!%p1116_p12), %s1307_s1, 640, %s129_s26, [#allocation4], %s1023_s9, %s1023_s9, %s1024_s10  }
  0x2a   : > { %p1317_p13 = scmp.ne.s32.totalorder %s1315_s24, 0 }
  0x2b   : > { %p1318_p1 = scmp.eq.s32.totalorder (!%p1317_p13), %s1080_s16, 0 }
  0x2c   : > { %154 = sbr.rel (%p1317_p13) target bundleno = 1489 (0x5d1), region = 32 }
  0x33   : > { %999 = dma.done.wait (%p1318_p1), [#allocation4], 640   ;;  %p1319_p0 = pmov %p1318_p1 }
  0x34   : > { %p177_p5 = scmp.lt.s32.totalorder %s1080_s16, 1  ;;  %v1025_v0 = vmov 0   ;;  %v1026_v1 = vmov 0.0   ;;  %s1027_s27 = smov 2   ;;  %vm1029_vm0 = vmmov 0   ;;  %v1158_v4 = vld [vmem:[%s1308_s2] sm:$0xff]  ;;  %v185_v6 = vlaneseq }
  0x35   : > { %1001 = vsyncadd (%p1319_p0), [#allocation4], 4294966656  ;;  %184 = vst [vmem:[#allocation2 + $0x10] sm:$0xff] %v1025_v0  ;;  %864 = vset.pattern.permute.xlu1 %v1025_v0  ;;  %759 = vmatprep.subr.bf16.mxu1 %v1026_v1  ;;  %s1028_s28 = smov 1   ;;  %v1164_v5 = vld [vmem:[%s1308_s2 + $0x8] sm:$0xff]  ;;  %vm309_vm3 = vcmask 392192  }
  0x36   : > { %182 = vst [vmem:[#allocation2] sm:$0xff] %v1025_v0  ;;  %183 = vst [vmem:[#allocation2 + $0x8] sm:$0xff] %v1025_v0  ;;  %s178_s19 = scalar_select %p177_p5, %s1080_s16, 1  ;;  %753 = vmatprep.subr.bf16.mxu0 %v1026_v1  ;;  %765 = vmatprep.mubr.msk.bf16.mxu1 %vm1029_vm0, %v1026_v1  ;;  %v186_v7 = vand.u32 127, %v185_v6  ;;  %v903_v18 = vld [vmem:[#allocation3] ss:$20 sps:$4 sm:$0xff]  }
  0x37   : > { %755 = vmatprep.mubr.msk.bf16.mxu0 %vm1029_vm0, %v1026_v1  ;;  %296 = vperm.xlu1 %864, %v1158_v4   ;;  %vm227_vm4 = vcmask 1043456   ;;  %v904_v21 = vld [vmem:[#allocation3 + $0x8] ss:$20 sps:$4 sm:$0xff]   ;;  %vm223_vm5 = vcmask 64512   ;;  %v1030_v33 = vmov 1   ;;  %v1031_v34 = vmov 2  }
  0x38   : > { %s720_s20 = sshll.u32 %s178_s19, 3  ;;  %v1167_v8 = vand.u32 31, %v186_v7  ;;  %875 = vset.pattern.permute.xlu0 %v1030_v33  ;;  %v905_v44 = vld [vmem:[#allocation3 + $0x4] ss:$20 sps:$4 sm:$0xff]   ;;  %s1032_s6 = smov 4   ;;  %v1033_v7 = vmov 3  }
  0x39   : > { %s180_s26 = scalar_lea.vmem %s1306_s0, %s720_s20  ;;  %s174_s7 = sand.u32 1, %s1012_s13  }
  0x3a   : > { %v202_v2 = vld [vmem:[%s180_s26] sm:$0xff]  ;;  %vm200_vm1 = vcmp.ge.s32.totalorder %v1167_v8, 2  ;;  %vm199_vm2 = vcmp.ge.s32.totalorder %v1167_v8, 1  ;;  %vm201_vm8 = vcmp.ge.s32.totalorder %v1167_v8, 4  ;;  %s719_s8 = sshll.u32 %s174_s7, 4  ;;  %s732_s11 = sshll.u32 %s1080_s16, 7 }
  0x3b   : > { %272 = vrot.lane.b32.xlu0 %v202_v2, %s1027_s27  ;;  %v207_v3 = vpack.c.bf16 %v202_v2, %v202_v2  ;;  %301 = vperm.xlu1 %864, %v1164_v5   ;;  %vm1193_vm6 = vmpackc.low %vm200_vm1, %vm200_vm1  ;;  %s176_s9 = scalar_lea.vmem [#allocation6], %s719_s8  ;;  %s1263_s20 = scalar_lea.hbm %s1309_s3, %s732_s11 }
  0x3c   : > { %vm911_vm7 = vmpackc.low %vm199_vm2, %vm199_vm2  ;;  %s639_s10 = sshll.u32 %s176_s9, 4  ;;  %s1265_s24 = scalar_lea.sflag [#allocation5], %s174_s7  ;;  %s1257_s10 = int_to_ptr.vmem [resolvable:$true] %s639_s10 }
  0x3d   : > { %286 = vst [vmem:[#allocation2 + $0x10] sm:$0xf] %v207_v3  ;;  %v229_v19 = vsel %vm227_vm4, %v207_v3, 0  ;;  %vm1222_vm9 = vmpackc.low %vm201_vm8, %vm201_vm8  ;;  %s954_s25 = scalar_lea.vmem %s1257_s10, 256  ;;  %p1324_p9 = scmp.ne.s32.totalorder %s1313_s22, 0 }
  0x3e   : > { %754 = vmatpush3.bf16.msra.mxu0 %v229_v19  ;;  %v906_v19 = vld [vmem:[#allocation3 + $0xc] ss:$20 sps:$4 sm:$0xff]   ;;  %p955_p6 = scmp.ne.s32.totalorder %s1257_s10, %s954_s25  ;;  %s1035_s16 = smov [#allocation6]  }
  0x3f   : > { %279 = vrot.lane.b32.xlu0 %v202_v2, %s1028_s28  ;;  %769 = vmatprep.subr.bf16.mxu0 %v1026_v1  ;;  %s958_s26 = sshll.u32 %s1035_s16, 4  ;;  %s959_s26 = int_to_ptr.vmem [resolvable:$false] %s958_s26 }
  0x40   : > { %876 = vset.pattern.permute.xlu1 %v1030_v33  ;;  %p956_p10 = pnand %p955_p6, %p1324_p9  ;;  %p961_p2 = scmp.lt.s32.totalorder %s1257_s10, %s959_s26 }
  0x41   : > { %756 = vmatmul.mubr.msk.bf16.vlgmr.msra.gmra.mrb[0].mxu0 %vm223_vm5, %v904_v21 }
  0x42   : > { %775 = vmatprep.mubr.msk.bf16.mxu0 %vm1029_vm0, %v1026_v1  ;;  %p957_p12 = pneg %p956_p10 }
  0x44   : > { %v293_v17 = vld [vmem:[#allocation2 + $0x10] sm:$0xff] }
  0xad   : > { %v273_v9 = vpop.permute.xlu0 %272 }
  0xae   : > { %v276_v10 = vsel %vm200_vm1, %v273_v9, 0.0 }
  0xaf   : > { %v277_v11 = vpack.c.bf16 %v276_v10, %v276_v10 }
  0xb1   : > { %278 = vst [vmem:[#allocation2] sm:$0xf] %v277_v11  ;;  %v280_v12 = vpop.permute.xlu0 %279 }
  0xb2   : > { %v283_v13 = vsel %vm199_vm2, %v280_v12, 0.0 }
  0xb3   : > { %v284_v14 = vpack.c.bf16 %v283_v13, %v283_v13 }
  0xb5   : > { %285 = vst [vmem:[#allocation2 + $0x8] sm:$0xf] %v284_v14 }
  0xb6   : > { %v297_v20 = vpop.permute.xlu1 %296 }
  0xb8   : > { %v291_v15 = vld [vmem:[#allocation2] sm:$0xff] }
  0xb9   : > { %760 = vmatpush3.bf16.msra.mxu1 %v291_v15 }
  0xba   : > { %761 = vmatprep.subr.bf16.mxu1 %v1026_v1  ;;  %v302_v25 = vpop.permute.xlu1 %301 }
  0xbc   : > { %v292_v16 = vld [vmem:[#allocation2 + $0x8] sm:$0xff] }
  0xbd   : > { %762 = vmatpush3.bf16.msra.mxu1 %v292_v16 }
  0xbe   : > { %763 = vmatprep.subr.bf16.mxu1 %v1026_v1 }
  0xc1   : > { %764 = vmatpush3.bf16.msra.mxu1 %v293_v17 }
  0xc2   : > { %779 = vmatprep.subr.bf16.mxu1 %v1026_v1 }
  0xc4   : > { %766 = vmatmul.mubr.msk.bf16.vlgmr.msra.gmra.mrb[0].mxu1 %vm309_vm3, %v903_v18 }
  0xc5   : > { %785 = vmatprep.mubr.msk.bf16.mxu1 %vm1029_vm0, %v1026_v1 }
 0x114   : > { %v265_v45 = vpop.f32.mrb[0].mxu0 }
 0x115   : > { %v757_v46 = vpop.f32.mrb[1].mxu0 }
 0x116   : > { %v268_v47 = vpop.f32.mrb[2].mxu0  ;;  %v907_v46 = vld [vmem:[#allocation3 + $0x10] ss:$20 sps:$4 sm:$0xff]  }
 0x117   : > { %v758_v48 = vpop.f32.mrb[3].mxu0 }
 0x197   : > { %v347_v22 = vpop.f32.mrb[0].mxu1 }
 0x198   : > { %v348_v23 = vadd.f32 %v347_v22, %v297_v20  ;;  %v767_v24 = vpop.f32.mrb[1].mxu1 }
 0x199   : > { %v350_v26 = vpop.f32.mrb[2].mxu1 }
 0x19a   : > { %v351_v27 = vadd.f32 %v350_v26, %v302_v25  ;;  %v768_v28 = vpop.f32.mrb[3].mxu1  ;;  %v354_v29 = vmax.f32 %v348_v23, 0.0 }
 0x19c   : > { %v355_v30 = vmax.f32 %v351_v27, 0.0 }
 0x19e   : > { %v372_v31 = vpack.c.bf16 %v355_v30, %v354_v29  ;;  %v870_v32 = vpack.i.bf16 %v355_v30, %v354_v29 }
 0x1a0   : > { %871 = vrot.lane.b32.xlu1 %v870_v32, %s1028_s28  ;;  %866 = vrot.lane.b32.xlu0 %v870_v32, %s1027_s27  ;;  %v1034_v32 = vmov 4  }
 0x1a4   : > { %388 = vperm.xlu1 %876, %v1164_v5   ;;  %383 = vperm.xlu0 %875, %v1158_v4  }
 0x1a8   : > { %877 = vset.pattern.permute.xlu1 %v1031_v34  ;;  %878 = vset.pattern.permute.xlu0 %v1031_v34 }
 0x1a9   : > { %210 = vperm.xlu1 %877, %v1158_v4   ;;  %215 = vperm.xlu0 %878, %v1164_v5  }
 0x1ad   : > { %889 = vset.pattern.permute.xlu0 %v1033_v7  ;;  %890 = vset.pattern.permute.xlu1 %v1033_v7 }
 0x1ae   : > { %475 = vperm.xlu0 %889, %v1158_v4  }
 0x1b2   : > { %902 = vset.pattern.permute.xlu0 %v1034_v32 }
 0x212   : > { %v872_v35 = vpop.permute.xlu1 %871  ;;  %v867_v36 = vpop.permute.xlu0 %866 }
 0x213   : > { %v874_v37 = vunpack.i.h.bf16 %v872_v35  ;;  %v873_v38 = vunpack.i.l.bf16 %v872_v35  ;;  %v869_v39 = vunpack.i.h.bf16 %v867_v36  ;;  %v868_v40 = vunpack.i.l.bf16 %v867_v36 }
 0x215   : > { %v909_v42 = vpack.c.bf16 %v869_v39, %v868_v40  ;;  %v912_v43 = vpack.c.bf16 %v874_v37, %v873_v38 }
 0x217   : > { %910 = vmatpush3.bf16.msk.msra.mxu0 %vm1193_vm6, %v909_v42 }
 0x218   : > { %771 = vmatprep.subr.bf16.mxu0 %v1026_v1 }
 0x21b   : > { %913 = vmatpush3.bf16.msk.msra.mxu0 %vm911_vm7, %v912_v43 }
 0x21c   : > { %773 = vmatprep.subr.bf16.mxu0 %v1026_v1 }
 0x21f   : > { %774 = vmatpush3.bf16.msra.mxu0 %v372_v31 }
 0x220   : > { %789 = vmatprep.subr.bf16.mxu0 %v1026_v1 }
 0x222   : > { %776 = vmatmul.mubr.msk.bf16.vlgmr.msra.gmra.mrb[4].mxu0 %vm309_vm3, %v905_v44 }
 0x223   : > { %795 = vmatprep.mubr.msk.bf16.mxu0 %vm1029_vm0, %v1026_v1  ;;  %v389_v49 = vpop.permute.xlu1 %388  ;;  %v384_v50 = vpop.permute.xlu0 %383 }
 0x228   : > { %v211_v51 = vpop.permute.xlu1 %210  ;;  %v216_v55 = vpop.permute.xlu0 %215 }
 0x229   : > { %v266_v57 = vadd.f32 %v265_v45, %v211_v51  ;;  %v269_v61 = vadd.f32 %v268_v47, %v216_v55 }
 0x22d   : > { %v476_v20 = vpop.permute.xlu0 %475 }
 0x2f5   : > { %v433_v52 = vpop.f32.mrb[4].mxu0 }
 0x2f6   : > { %v434_v53 = vadd.f32 %v433_v52, %v384_v50  ;;  %v777_v54 = vpop.f32.mrb[5].mxu0 }
 0x2f7   : > { %v436_v56 = vpop.f32.mrb[6].mxu0 }
 0x2f8   : > { %v440_v58 = vmax.f32 %v434_v53, 0.0  ;;  %v437_v59 = vadd.f32 %v436_v56, %v389_v49  ;;  %v778_v60 = vpop.f32.mrb[7].mxu0 }
 0x2fa   : > { %v442_v62 = vadd.f32 %v440_v58, %v266_v57  ;;  %v441_v63 = vmax.f32 %v437_v59, 0.0 }
 0x2fc   : > { %v443_v0 = vadd.f32 %v441_v63, %v269_v61  ;;  %v1208_v2 = vmax.f32 %v442_v62, 0.0 }
 0x2fe   : > { %v1210_v3 = vmax.f32 %v443_v0, 0.0 }
 0x300   : > { %v879_v6 = vpack.i.bf16 %v1210_v3, %v1208_v2  ;;  %v464_v18 = vpack.c.bf16 %v1210_v3, %v1208_v2 }
 0x302   : > { %880 = vrot.lane.b32.xlu1 %v879_v6, %s1032_s6 }
 0x306   : > { %885 = vrot.lane.b32.xlu1 %v879_v6, %s1027_s27 }
 0x30a   : > { %480 = vperm.xlu1 %890, %v1164_v5  }
 0x30e   : > { %901 = vset.pattern.permute.xlu1 %v1034_v32 }
 0x374   : > { %v881_v9 = vpop.permute.xlu1 %880 }
 0x375   : > { %v883_v10 = vunpack.i.h.bf16 %v881_v9  ;;  %v882_v11 = vunpack.i.l.bf16 %v881_v9 }
 0x377   : > { %v915_v16 = vpack.c.bf16 %v883_v10, %v882_v11 }
 0x378   : > { %v886_v12 = vpop.permute.xlu1 %885 }
 0x379   : > { %v888_v13 = vunpack.i.h.bf16 %v886_v12  ;;  %v887_v14 = vunpack.i.l.bf16 %v886_v12  ;;  %916 = vmatpush3.bf16.msk.msra.mxu1 %vm1222_vm9, %v915_v16 }
 0x37a   : > { %781 = vmatprep.subr.bf16.mxu1 %v1026_v1 }
 0x37b   : > { %v918_v17 = vpack.c.bf16 %v888_v13, %v887_v14 }
 0x37d   : > { %919 = vmatpush3.bf16.msk.msra.mxu1 %vm1193_vm6, %v918_v17 }
 0x37e   : > { %783 = vmatprep.subr.bf16.mxu1 %v1026_v1 }
 0x381   : > { %784 = vmatpush3.bf16.msra.mxu1 %v464_v18 }
 0x384   : > { %786 = vmatmul.mubr.msk.bf16.vlgmr.msra.gmra.mrb[4].mxu1 %vm309_vm3, %v906_v19 }
 0x389   : > { %v481_v22 = vpop.permute.xlu1 %480 }
 0x457   : > { %v525_v21 = vpop.f32.mrb[4].mxu1 }
 0x458   : > { %v526_v23 = vadd.f32 %v525_v21, %v476_v20  ;;  %v787_v24 = vpop.f32.mrb[5].mxu1 }
 0x459   : > { %v528_v25 = vpop.f32.mrb[6].mxu1 }
 0x45a   : > { %v529_v26 = vadd.f32 %v528_v25, %v481_v22  ;;  %v788_v27 = vpop.f32.mrb[7].mxu1  ;;  %v532_v28 = vmax.f32 %v526_v23, 0.0 }
 0x45c   : > { %v533_v29 = vmax.f32 %v529_v26, 0.0 }
 0x45e   : > { %v550_v30 = vpack.c.bf16 %v533_v29, %v532_v28  ;;  %v896_v31 = vpack.i.bf16 %v533_v29, %v532_v28 }
 0x460   : > { %551 = vst [vmem:[#allocation2 + $0x10] sm:$0xff] %v550_v30  ;;  %897 = vrot.lane.b32.xlu0 %v896_v31, %s1027_s27  ;;  %892 = vrot.lane.b32.xlu1 %v896_v31, %s1032_s6  ;;  %s960_s27 = scalar_lea.vmem %s959_s26, 512 }
 0x461   : > { %p962_p3 = scmp.lt.s32.totalorder %s960_s27, %s954_s25 }
 0x463   : > { %p963_p4 = por %p962_p3, %p961_p2 }
 0x464   : > { %561 = vperm.xlu1 %901, %v1158_v4   ;;  %566 = vperm.xlu0 %902, %v1164_v5  }
 0x465   : > { %p964_p7 = pnand %p963_p4, %p957_p12 }
 0x4d2   : > { %v898_v33 = vpop.permute.xlu0 %897  ;;  %v893_v34 = vpop.permute.xlu1 %892 }
 0x4d3   : > { %v900_v35 = vunpack.i.h.bf16 %v898_v33  ;;  %v899_v36 = vunpack.i.l.bf16 %v898_v33  ;;  %v895_v37 = vunpack.i.h.bf16 %v893_v34  ;;  %v894_v38 = vunpack.i.l.bf16 %v893_v34 }
 0x4d5   : > { %v547_v39 = vsel %vm200_vm1, %v900_v35, 0.0  ;;  %v546_v40 = vsel %vm200_vm1, %v899_v36, 0.0  ;;  %v539_v42 = vsel %vm201_vm8, %v895_v37, 0.0  ;;  %v538_v4 = vsel %vm201_vm8, %v894_v38, 0.0 }
 0x4d6   : > { %v548_v5 = vpack.c.bf16 %v547_v39, %v546_v40  ;;  %v540_v43 = vpack.c.bf16 %v539_v42, %v538_v4  ;;  %v921_v44 = vpack.c.bf16 %v895_v37, %v894_v38  ;;  %v924_v45 = vpack.c.bf16 %v900_v35, %v899_v36 }
 0x4d8   : > { %549 = vst [vmem:[#allocation2 + $0x8] sm:$0xff] %v548_v5  ;;  %541 = vst [vmem:[#allocation2] sm:$0xff] %v540_v43  ;;  %922 = vmatpush3.bf16.msk.msra.mxu0 %vm1222_vm9, %v921_v44 }
 0x4d9   : > { %791 = vmatprep.subr.bf16.mxu0 %v1026_v1 }
 0x4dc   : > { %925 = vmatpush3.bf16.msk.msra.mxu0 %vm1193_vm6, %v924_v45 }
 0x4dd   : > { %793 = vmatprep.subr.bf16.mxu0 %v1026_v1 }
 0x4e0   : > { %794 = vmatpush3.bf16.msra.mxu0 %v550_v30 }
 0x4e3   : > { %796 = vmatmul.mubr.msk.bf16.vlgmr.msra.gmra.mrb[8].mxu0 %vm309_vm3, %v907_v46  ;;  %v562_v8 = vpop.permute.xlu1 %561  ;;  %v567_v48 = vpop.permute.xlu0 %566 }
 0x5b6   : > { %v611_v47 = vpop.f32.mrb[8].mxu0 }
 0x5b7   : > { %v612_v49 = vadd.f32 %v611_v47, %v562_v8  ;;  %v797_v50 = vpop.f32.mrb[9].mxu0 }
 0x5b8   : > { %v614_v51 = vpop.f32.mrb[10].mxu0 }
 0x5b9   : > { %v618_v52 = vmax.f32 %v612_v49, 0.0  ;;  %v615_v53 = vadd.f32 %v614_v51, %v567_v48  ;;  %v798_v54 = vpop.f32.mrb[11].mxu0 }
 0x5bb   : > { %v620_v1 = vadd.f32 %v618_v52, %v1208_v2  ;;  %v619_v41 = vmax.f32 %v615_v53, 0.0 }
 0x5bd   : > { %v622_v55 = vmax.f32 %v620_v1, 0.0  ;;  %v621_v56 = vadd.f32 %v619_v41, %v1210_v3 }
 0x5bf   : > { %624 = vst [vmem:[%s176_s9] sm:$0xff] %v622_v55  ;;  %v623_v57 = vmax.f32 %v621_v56, 0.0 }
 0x5c1   : > { %625 = vst [vmem:[%s176_s9 + $0x8] sm:$0xff] %v623_v57 }
 0x5c2   : > { %967 = shalt.err (!%p964_p7)
}
 0x5c3   : > { %s968_s28 = scalar_lea.hbm %s1263_s20, 256  ;;  %s972_s4 = scalar_lea.hbm %s1309_s3, 512 }
 0x5c4   : > { %p969_p8 = scmp.ne.s32.totalorder %s1263_s20, %s968_s28  ;;  %p973_p1 = scmp.lt.u32.totalorder %s1263_s20, %s1309_s3 }
 0x5c5   : > { %p974_p0 = scmp.lt.u32.totalorder %s972_s4, %s968_s28  ;;  %p976_p6 = scmp.lt.u32.totalorder %s968_s28, %s1263_s20 }
 0x5c6   : > { %p970_p11 = pnand %p969_p8, %p1324_p9 }
 0x5c7   : > { %p975_p5 = por %p974_p0, %p973_p1 }
 0x5c8   : > { %p971_p13 = pneg %p970_p11 }
 0x5c9   : > { %p977_p10 = por %p976_p6, %p975_p5 }
 0x5cb   : > { %p978_p12 = pnand %p977_p10, %p971_p13 }
 0x5cd   : > { %981 = shalt.err (!%p978_p12)
}
 0x5ce   : > { %s1036_s7 = smov 128   ;;  %s1037_s8 = smov 256  }
 0x5cf   : > { %s1038_s9 = smov 8  }
 0x5d0   : > { %803 = dma.vmem_to_hbm [thread:$0]  (%p1324_p9), %s1257_s10, 256, %s1263_s20, %s1265_s24, %s1036_s7, %s1037_s8, %s1038_s9  }
 0x5d1 PF: > { %p815_p2 = scmp.ge.s32.totalorder %s1020_s15, 2  ;;  %s654_s11 = sand.u32 1, %s1008_s12  }
 0x5d2   : > { %p1325_p3 = scmp.ne.s32.totalorder %s1314_s23, 0  ;;  %s655_s17 = scalar_lea.sflag [#allocation5], %s654_s11 }
 0x5d4   : > { %p810_p4 = pnand %p815_p2, %p1325_p3 }
 0x5d6   : > { %1003 = dma.done.wait (!%p810_p4), %s655_s17, 256  }
 0x5d7   : > { %1005 = vsyncadd (!%p810_p4), %s655_s17, 4294967040  ;;  %p14_p7 = scmp.ge.s32.totalorder %s1084_s18, 4   ;;  %s1326_s12 = smov %s1012_s13 }
 0x5d8   : > { %s1327_s13 = smov %s1016_s14  ;;  %s1328_s14 = smov %s1095_s21 }
 0x5d9   : > { %s1329_s15 = smov %s1084_s18  ;;  %16 = sbr.rel (!%p14_p7) target bundleno = 4 (0x4), region = 72 }
 0x5e0   :  { %660 = vsyncpa [#allocation4], 1 }
 0x5e1   :  { %662 = vsyncpa [#allocation4 + $0x1], 1 }
 0x5e2   :  { %663 = vsyncpa [#allocation5], 1 }
 0x5e3   :  { %665 = vsyncpa [#allocation5 + $0x1], 1 }

</bundles_post_ra>
